<compile_context>
chip_gen: v6e
topology: v6e:2x2x1
jax: 0.10.0
libtpu: 0.0.40
codegen_flags: <defaults>
</compile_context>

<pallas_src>
import functools

import jax
import jax.numpy as jnp
from jax import lax
from jax.experimental import pallas as pl
from jax.experimental.pallas import tpu as pltpu

_NEG = -1e30                       # vocab padding value (underflows to 0 in exp)


def _round_up(x, m):
    return (x + m - 1) // m * m


def _vmem_limit_bytes():
    """Generation-aware scoped-VMEM limit (v7x: 64 MiB physical -> ~48 MiB)."""
    try:
        cap = int(pltpu.get_tpu_info().vmem_capacity_bytes)
        return int(min(max(cap * 3 // 4, 32 * 1024 * 1024), 96 * 1024 * 1024))
    except Exception:
        return 32 * 1024 * 1024


# ---------------------------------------------------------------------------
# Kernel 1: weighted cross-entropy with ignore_index=0
#   grid = (row_tiles, vocab_tiles); online logsumexp over the vocab axis,
#   lane-dense per-row-tile partial (loss_sum, weight_sum) outputs.
# ---------------------------------------------------------------------------
def _ce_kernel(scores_ref, gtruth_ref, wt_ref, part_ref,
               m_sc, l_sc, xt_sc, *, tile_v):
    j = pl.program_id(1)
    nv = pl.num_programs(1)

    @pl.when(j == 0)
    def _init():
        m_sc[...] = jnp.full(m_sc.shape, -jnp.inf, jnp.float32)
        l_sc[...] = jnp.zeros(l_sc.shape, jnp.float32)
        xt_sc[...] = jnp.zeros(xt_sc.shape, jnp.float32)

    x = scores_ref[...].astype(jnp.float32)          # [TN, TV]
    y = gtruth_ref[...]                              # [TN, 1] int32

    # online logsumexp over vocab tiles
    m_old = m_sc[...]
    m_new = jnp.maximum(m_old, jnp.max(x, axis=-1, keepdims=True))
    l_sc[...] = l_sc[...] * jnp.exp(m_old - m_new) + jnp.sum(
        jnp.exp(x - m_new), axis=-1, keepdims=True)
    m_sc[...] = m_new

    # target-logit gather for this vocab tile: int-iota select + lane reduce
    # (no f32 one-hot, no extra multiply).
    iota_v = lax.broadcasted_iota(jnp.int32, x.shape, 1) + j * tile_v
    xt_sc[...] += jnp.sum(jnp.where(iota_v == y, x, 0.0),
                          axis=-1, keepdims=True)

    @pl.when(j == nv - 1)
    def _finalize():
        lse = m_sc[...] + jnp.log(l_sc[...])         # [TN, 1]
        wt = wt_ref[...]                             # weight[target] * (target!=0)
        loss_part = jnp.sum(wt * (lse - xt_sc[...]))
        wsum_part = jnp.sum(wt)
        lane = lax.broadcasted_iota(jnp.int32, part_ref.shape, 2)
        part_ref[...] = jnp.where(lane == 0, loss_part,
                                  jnp.where(lane == 1, wsum_part, 0.0))


def cross_entropy_pallas(scores, gtruth, weight, size_average=True,
                         *, tile_n=None, tile_v=None):
    n, v = scores.shape
    limit = _vmem_limit_bytes()
    budget = int(limit * 0.9)
    in_bytes = jnp.dtype(scores.dtype).itemsize

    if tile_n is None:
        tile_n = 512
    tile_n = _round_up(min(tile_n, _round_up(n, 8)), 8)
    n_pad = _round_up(n, tile_n)

    if tile_v is None:
        # bigger blocks amortize the per-grid-step overhead; shrink only as
        # needed to stay inside the scoped-VMEM budget (x f32 + temps ~ 12B/el).
        tile_v = 4096 if in_bytes <= 2 else 2048
        while tile_v > 512 and tile_n * tile_v * (2 * in_bytes + 12) > budget:
            tile_v //= 2
    if tile_v >= v:
        tile_v = v                                   # single full-vocab block
    else:
        tile_v = _round_up(tile_v, 128)
    v_pad = _round_up(v, tile_v)

    scores_p = scores
    if v_pad != v:
        scores_p = jnp.pad(scores_p, ((0, 0), (0, v_pad - v)),
                           constant_values=_NEG)
    if n_pad != n:
        scores_p = jnp.pad(scores_p, ((0, n_pad - n), (0, 0)))

    gt = jnp.reshape(gtruth, (-1,)).astype(jnp.int32)
    if n_pad != n:
        gt = jnp.pad(gt, (0, n_pad - n))             # padded rows -> ignored

    # gather weight[target] once in plain JAX, folding in the ignore_index mask;
    # removes the per-(row,vocab)-tile weight stream and one-hot reduce.
    wt = jnp.where(gt != 0, weight.astype(jnp.float32)[gt], 0.0)
    gt = gt.reshape(n_pad, 1)
    wt = wt.reshape(n_pad, 1)

    n_tiles = n_pad // tile_n
    v_tiles = v_pad // tile_v

    grid_spec = pltpu.PrefetchScalarGridSpec(
        num_scalar_prefetch=0,
        grid=(n_tiles, v_tiles),
        in_specs=[
            pl.BlockSpec((tile_n, tile_v), lambda i, j: (i, j)),
            pl.BlockSpec((tile_n, 1), lambda i, j: (i, 0)),
            pl.BlockSpec((tile_n, 1), lambda i, j: (i, 0)),
        ],
        out_specs=pl.BlockSpec((1, 8, 128), lambda i, j: (i, 0, 0)),
        scratch_shapes=[pltpu.VMEM((tile_n, 1), jnp.float32)] * 3,
    )
    parts = pl.pallas_call(
        functools.partial(_ce_kernel, tile_v=tile_v),
        out_shape=jax.ShapeDtypeStruct((n_tiles, 8, 128), jnp.float32),
        grid_spec=grid_spec,
        compiler_params=pltpu.CompilerParams(
            dimension_semantics=("parallel", "arbitrary"),
            vmem_limit_bytes=limit),
    )(scores_p, gt, wt)

    loss_sum = jnp.sum(parts[:, 0, 0])
    wsum = jnp.sum(parts[:, 0, 1])
    if size_average:
        # guard: all targets ignored / zero-weight -> return 0 instead of NaN
        return jnp.where(wsum > 0, loss_sum / wsum, jnp.zeros_like(loss_sum))
    return loss_sum


# ---------------------------------------------------------------------------
# Kernel 2: duploss "summ" + argmax indices, streamed over S.  The "previous"
# input is restricted to the trailing k-band (k_pad rows) of the previous tile.
# Blocks inside the kernel are batch-leading: [B, T, V].
# ---------------------------------------------------------------------------
def _dup_kernel(cur_ref, prev_ref, summ_ref, idx_ref, *, k, s_real, tile_s):
    cur = cur_ref[...].astype(jnp.float32)           # [B, T, V]
    prev = prev_ref[...]                             # [B, Kp, V] (input dtype)
    b, t, v = cur.shape
    kp = prev.shape[1]

    iota_c = lax.broadcasted_iota(jnp.int32, (b, t, v), 2)
    iota_p = lax.broadcasted_iota(jnp.int32, (b, kp, v), 2)

    # current tile: one max pass shared by softmax numerator and argmax
    # (argmax on raw logits, int32 iota, first-index tie-break via min).
    mx_c = jnp.max(cur, axis=-1, keepdims=True)
    e = jnp.exp(cur - mx_c)                          # un-normalized numerator
    denom = jnp.sum(e, axis=-1, keepdims=True)       # [B, T, 1]
    idx_c = jnp.min(jnp.where(cur == mx_c, iota_c, v), axis=-1)   # [B, T] int32
    idx_ref[...] = idx_c[None]                       # lane-dense [1, B, T]

    # previous k-band: only its argmax is needed; stays in the input dtype.
    mx_p = jnp.max(prev, axis=-1, keepdims=True)
    idx_p = jnp.min(jnp.where(prev == mx_p, iota_p, v), axis=-1)  # [B, Kp]

    # one-hot gathers as bf16 MXU contractions of the UN-normalized numerator;
    # softmax normalization is applied to the small [B, T, *] results (EUP recip).
    e_bf = e.astype(jnp.bfloat16)
    oh_c = (iota_c == idx_c[:, :, None]).astype(jnp.bfloat16)
    oh_p = (iota_p == idx_p[:, :, None]).astype(jnp.bfloat16)
    inv = pl.reciprocal(denom, approx=True)          # [B, T, 1]
    g_same = jnp.einsum('biv,bjv->bij', e_bf, oh_c,
                        preferred_element_type=jnp.float32) * inv   # [B, T, T]
    g_prev = jnp.einsum('biv,bjv->bij', e_bf, oh_p,
                        preferred_element_type=jnp.float32) * inv   # [B, T, Kp]

    # banded pair weights in global row coordinates:
    #   w[i, j] = 1/min(i, k)   iff   max(0, i - k) <= j < i   and   i < s_real
    base = pl.program_id(0) * tile_s
    i_s = lax.broadcasted_iota(jnp.int32, (t, t), 0) + base
    j_s = lax.broadcasted_iota(jnp.int32, (t, t), 1) + base
    i_p = lax.broadcasted_iota(jnp.int32, (t, kp), 0) + base
    j_p = lax.broadcasted_iota(jnp.int32, (t, kp), 1) + base - kp
    coef_s = 1.0 / jnp.maximum(jnp.minimum(i_s, k), 1).astype(jnp.float32)
    coef_p = 1.0 / jnp.maximum(jnp.minimum(i_p, k), 1).astype(jnp.float32)
    w_same = jnp.where((j_s < i_s) & (j_s >= i_s - k) & (i_s < s_real),
                       coef_s, 0.0)
    w_prev = jnp.where((j_p >= 0) & (j_p >= i_p - k) & (i_p < s_real),
                       coef_p, 0.0)

    partial = (jnp.sum(g_same * w_same[None]) + jnp.sum(g_prev * w_prev[None]))
    summ_ref[...] = partial + jnp.zeros(summ_ref.shape, jnp.float32)


def _k_pad_for(tile_s, k, n_tiles):
    """Smallest multiple of 8 >= k that divides tile_s (8 if single tile)."""
    if n_tiles == 1:
        return 8
    kp = _round_up(min(k, tile_s), 8)
    while kp < tile_s and tile_s % kp != 0:
        kp += 8
    if tile_s % kp != 0:
        kp = tile_s
    return kp


def _dup_vmem_bytes(tile_s, k_pad, b, v, in_bytes):
    io = 2 * (b * tile_s * v + b * k_pad * v) * in_bytes    # double-buffered in
    io += 2 * (b * tile_s * 4 + 8 * 128 * 4)                # double-buffered out
    tmp = b * tile_s * v * (4 + 4 + 2 + 2)                  # cur, e, e_bf, oh_c
    tmp += b * k_pad * v * 2                                # oh_p
    tmp += 2 * b * tile_s * (tile_s + k_pad) * 4            # g_same / g_prev
    return io + tmp


def duploss_pallas(pred, k=30, *, tile_s=None):
    s, b, v = pred.shape
    limit = _vmem_limit_bytes()
    budget = int(limit * 0.9)
    in_bytes = jnp.dtype(pred.dtype).itemsize
    s8 = _round_up(s, 8)

    user_tile = tile_s is not None
    if tile_s is None:
        tile_s = s8 if s8 <= 256 else max(_round_up(k, 8), 128)
    tile_s = _round_up(min(tile_s, s8), 8)
    min_tile = _round_up(min(max(k, 8), s8), 8)

    while True:
        s_pad = _round_up(s, tile_s)
        n_tiles = s_pad // tile_s
        if n_tiles > 1 and tile_s < k:
            raise ValueError("tile_s must be >= k so the k-band history fits "
                             "in the previous tile's trailing band")
        k_pad = _k_pad_for(tile_s, k, n_tiles)
        if (user_tile or tile_s <= min_tile
                or _dup_vmem_bytes(tile_s, k_pad, b, v, in_bytes) <= budget):
            break
        tile_s = max(min_tile, _round_up(tile_s // 2, 8))
    # TODO(synk): for vocabularies whose whole-V blocks exceed VMEM (notably
    # v7x's 64 MiB) the vocab axis must also be streamed (online softmax /
    # argmax over V tiles); not implemented here.

    # Layout plumbing: [S, B, V] -> [B, S, V] so blocks are batch-leading and the
    # in-kernel batched MXU contraction needs no in-kernel relayout.
    # TODO(synk): this is a full pred-sized HBM round trip; drop it once the
    # producer emits [B, S, V] (flagged by the perf review).
    pred_b = jnp.transpose(pred, (1, 0, 2))
    if s_pad != s:
        pred_b = jnp.pad(pred_b, ((0, 0), (0, s_pad - s), (0, 0)))

    step = tile_s // k_pad
    grid_spec = pltpu.PrefetchScalarGridSpec(
        num_scalar_prefetch=0,
        grid=(n_tiles,),
        in_specs=[
            pl.BlockSpec((b, tile_s, v), lambda i: (0, i, 0)),
            # trailing k-band of the previous tile only (k_pad rows, not tile_s)
            pl.BlockSpec((b, k_pad, v),
                         lambda i: (0, jnp.maximum(i * step - 1, 0), 0)),
        ],
        out_specs=[
            pl.BlockSpec((1, 8, 128), lambda i: (i, 0, 0)),
            pl.BlockSpec((1, b, tile_s), lambda i: (i, 0, 0)),
        ],
    )
    summ_parts, idx_parts = pl.pallas_call(
        functools.partial(_dup_kernel, k=k, s_real=s, tile_s=tile_s),
        out_shape=(
            jax.ShapeDtypeStruct((n_tiles, 8, 128), jnp.float32),
            jax.ShapeDtypeStruct((n_tiles, b, tile_s), jnp.int32),
        ),
        grid_spec=grid_spec,
        compiler_params=pltpu.CompilerParams(
            dimension_semantics=("parallel",),
            vmem_limit_bytes=limit),
    )(pred_b, pred_b)

    summ = jnp.sum(summ_parts[:, 0, 0])
    predidx = jnp.transpose(idx_parts, (1, 0, 2)).reshape(b, s_pad)[:, :s]

    # TODO(synk): dup_percent is data-dependent set membership ("seen before");
    # computed in plain JAX from the kernel's argmax output.
    nz = predidx != 0
    eq = predidx[:, :, None] == predidx[:, None, :]
    earlier = (jnp.arange(s)[:, None] > jnp.arange(s)[None, :])[None, :, :]
    seen = jnp.any(eq & earlier, axis=2)
    uniq = jnp.sum(nz & ~seen, axis=1).astype(jnp.float32)
    wordcnt = jnp.sum(nz, axis=1).astype(jnp.float32)
    tu = jnp.mean(uniq / jnp.maximum(wordcnt, 1.0))
    return summ, tu


# ---------------------------------------------------------------------------
# hybrid.forward
# ---------------------------------------------------------------------------
def hybrid_forward(scores, gtruth, pred, weight, *, alpha=0.7, k=30,
                   size_average=True, ce_tile_n=None, ce_tile_v=None,
                   dup_tile_s=None):
    cross = cross_entropy_pallas(scores, gtruth, weight, size_average,
                                 tile_n=ce_tile_n, tile_v=ce_tile_v)
    local, dup_percent = duploss_pallas(pred, k=k, tile_s=dup_tile_s)
    if alpha == 0:
        total = cross
    else:
        total = (1.0 - alpha) * cross + alpha * local
    return total, cross, dup_percent


# ---------------------------------------------------------------------------
# Pure-JAX reference (mirrors the PyTorch module) for correctness checks.
# ---------------------------------------------------------------------------
def _reference(scores, gtruth, pred, weight, alpha=0.7, k=30):
    scores = scores.astype(jnp.float32)
    pred = pred.astype(jnp.float32)
    weight = weight.astype(jnp.float32)
    gtruth = gtruth.reshape(-1).astype(jnp.int32)

    logp = jax.nn.log_softmax(scores, axis=-1)
    n = scores.shape[0]
    tl = logp[jnp.arange(n), gtruth]
    wt = weight[gtruth]
    valid = (gtruth != 0).astype(jnp.float32)
    wsum = jnp.sum(valid * wt)
    cross = jnp.where(wsum > 0, -jnp.sum(valid * wt * tl) / wsum, 0.0)

    soft = jax.nn.softmax(pred, axis=-1)
    idx = jnp.argmax(pred, axis=-1)                  # [S, B]
    s_len, b_sz, _ = pred.shape
    summ = jnp.float32(0.0)
    for i in range(1, s_len):
        lo = max(0, i - k)
        g = soft[i][jnp.arange(b_sz)[:, None], idx[lo:i].T]   # [B, window]
        summ = summ + jnp.sum(g) / min(i, k)

    tu = jnp.float32(0.0)
    for bb in range(b_sz):
        ids = idx[:, bb]
        nzb = ids != 0
        eq = ids[:, None] == ids[None, :]
        earlier = jnp.arange(s_len)[:, None] > jnp.arange(s_len)[None, :]
        seen = jnp.any(eq & earlier, axis=1)
        tu = tu + jnp.sum(nzb & ~seen) / jnp.maximum(jnp.sum(nzb), 1)
    tu = tu / b_sz

    total = cross if alpha == 0 else (1.0 - alpha) * cross + alpha * summ
    return total, cross, tu


if __name__ == "__main__":
    def check(got, want, rtol, name):
        g, r = float(got), float(want)
        assert abs(g - r) <= 1e-5 + rtol * abs(r), (name, g, r)

    # --- small shapes consistent with the module -----------------------------
    key = jax.random.PRNGKey(0)
    S, B, V = 8, 4, 16                    # seq, batch, vocab
    k1, k2, k3 = jax.random.split(key, 3)
    pred = jax.random.normal(k1, (S, B, V), dtype=jnp.float32)
    scores = jax.random.normal(k2, (S * B, V), dtype=jnp.float32)
    gtruth = jax.random.randint(k3, (S * B,), 0, V, dtype=jnp.int32)
    weight = jnp.ones((V,), jnp.float32).at[0].set(0.0)

    total, cross, dup = hybrid_forward(scores, gtruth, pred, weight,
                                       alpha=0.7, k=30, size_average=True)
    jax.block_until_ready((total, cross, dup))
    t_ref, c_ref, d_ref = _reference(scores, gtruth, pred, weight, 0.7, 30)
    check(cross, c_ref, 1e-4, "cross")
    check(total, t_ref, 2e-2, "total")          # bf16 MXU operands in duploss
    check(dup, d_ref, 1e-5, "dup_percent")

    # --- exercise the tiled paths: multi row/vocab/seq tiles, bf16 inputs ----
    S2, B2, V2, K2 = 40, 2, 300, 30
    k4, k5, k6 = jax.random.split(jax.random.PRNGKey(1), 3)
    pred2 = jax.random.normal(k4, (S2, B2, V2)).astype(jnp.bfloat16)
    scores2 = jax.random.normal(k5, (S2 * B2, V2)).astype(jnp.bfloat16)
    gtruth2 = jax.random.randint(k6, (S2 * B2,), 0, V2, dtype=jnp.int32)
    weight2 = jnp.ones((V2,), jnp.float32).at[0].set(0.0)

    total2, cross2, dup2 = hybrid_forward(
        scores2, gtruth2, pred2, weight2, alpha=0.7, k=K2,
        ce_tile_n=64, ce_tile_v=128, dup_tile_s=32)
    jax.block_until_ready((total2, cross2, dup2))
    t2_ref, c2_ref, d2_ref = _reference(scores2, gtruth2, pred2, weight2,
                                        0.7, K2)
    check(cross2, c2_ref, 1e-3, "cross2")
    check(total2, t2_ref, 2e-2, "total2")
    check(dup2, d2_ref, 1e-5, "dup_percent2")

    print("KERNEL_OK")
</pallas_src>

<mosaic_0001>
module attributes {stable_mosaic.version = 11 : i64} {
  func.func @_ce_kernel(%arg0: i32, %arg1: i32, %arg2: memref<32x16xf32, #tpu.memory_space<vmem>>, %arg3: memref<32x1xi32, #tpu.memory_space<vmem>>, %arg4: memref<32x1xf32, #tpu.memory_space<vmem>>, %arg5: memref<1x8x128xf32, #tpu.memory_space<vmem>>, %arg6: memref<32x1xf32, #tpu.memory_space<vmem>>, %arg7: memref<32x1xf32, #tpu.memory_space<vmem>>, %arg8: memref<32x1xf32, #tpu.memory_space<vmem>>) attributes {dimension_semantics = [#tpu.dimension_semantics<parallel>, #tpu.dimension_semantics<arbitrary>], iteration_bounds = array<i64: 1, 1>, scalar_prefetch = 0 : i64, scratch_operands = 3 : i64, tpu.core_type = #tpu.core_type<tc>, window_params = [{transform_indices = @transform_0, window_bounds = array<i64: 32, 16>}, {transform_indices = @transform_1, window_bounds = array<i64: 32, 1>}, {transform_indices = @transform_2, window_bounds = array<i64: 32, 1>}, {transform_indices = @transform_3, window_bounds = array<i64: 1, 8, 128>}]} {
    %c0_i32 = arith.constant 0 : i32
    %0 = arith.cmpi eq, %arg1, %c0_i32 : i32
    %1 = arith.extui %0 : i1 to i32
    %c0_i32_0 = arith.constant 0 : i32
    %2 = arith.cmpi ne, %1, %c0_i32_0 : i32
    scf.if %2 {
      %cst_21 = arith.constant 0xFF800000 : f32
      %37 = vector.broadcast %cst_21 : f32 to vector<32x1xf32>
      %c0_22 = arith.constant 0 : index
      %c0_23 = arith.constant 0 : index
      %38 = vector.load %arg6[%c0_22, %c0_23] : memref<32x1xf32, #tpu.memory_space<vmem>>, vector<32x1xf32>
      tpu.vector_store %arg6[%c0_22, %c0_23], %37 {strides = array<i32>} : memref<32x1xf32, #tpu.memory_space<vmem>>, vector<32x1xf32>,
      %cst_24 = arith.constant 0.000000e+00 : f32
      %39 = vector.broadcast %cst_24 : f32 to vector<32x1xf32>
      %c0_25 = arith.constant 0 : index
      %c0_26 = arith.constant 0 : index
      %40 = vector.load %arg7[%c0_25, %c0_26] : memref<32x1xf32, #tpu.memory_space<vmem>>, vector<32x1xf32>
      tpu.vector_store %arg7[%c0_25, %c0_26], %39 {strides = array<i32>} : memref<32x1xf32, #tpu.memory_space<vmem>>, vector<32x1xf32>,
      %cst_27 = arith.constant 0.000000e+00 : f32
      %41 = vector.broadcast %cst_27 : f32 to vector<32x1xf32>
      %c0_28 = arith.constant 0 : index
      %c0_29 = arith.constant 0 : index
      %42 = vector.load %arg8[%c0_28, %c0_29] : memref<32x1xf32, #tpu.memory_space<vmem>>, vector<32x1xf32>
      tpu.vector_store %arg8[%c0_28, %c0_29], %41 {strides = array<i32>} : memref<32x1xf32, #tpu.memory_space<vmem>>, vector<32x1xf32>,
    } else {
    }
    %c0 = arith.constant 0 : index
    %c0_1 = arith.constant 0 : index
    %3 = vector.load %arg2[%c0, %c0_1] : memref<32x16xf32, #tpu.memory_space<vmem>>, vector<32x16xf32>
    %c0_2 = arith.constant 0 : index
    %c0_3 = arith.constant 0 : index
    %4 = vector.load %arg3[%c0_2, %c0_3] : memref<32x1xi32, #tpu.memory_space<vmem>>, vector<32x1xi32>
    %c0_4 = arith.constant 0 : index
    %c0_5 = arith.constant 0 : index
    %5 = vector.load %arg6[%c0_4, %c0_5] : memref<32x1xf32, #tpu.memory_space<vmem>>, vector<32x1xf32>
    %cst = arith.constant dense<0xFF800000> : vector<32xf32>
    %6 = vector.multi_reduction <maximumf>, %3, %cst [1] : vector<32x16xf32> to vector<32xf32>
    %7 = vector.shape_cast %6 : vector<32xf32> to vector<32x1xf32>
    %8 = arith.maximumf %5, %7 : vector<32x1xf32>
    %c0_6 = arith.constant 0 : index
    %c0_7 = arith.constant 0 : index
    %9 = vector.load %arg7[%c0_6, %c0_7] : memref<32x1xf32, #tpu.memory_space<vmem>>, vector<32x1xf32>
    %10 = arith.subf %5, %8 : vector<32x1xf32>
    %11 = math.exp %10 : vector<32x1xf32>
    %12 = arith.mulf %9, %11 : vector<32x1xf32>
    %13 = vector.broadcast %8 : vector<32x1xf32> to vector<32x16xf32>
    %14 = arith.subf %3, %13 : vector<32x16xf32>
    %15 = math.exp %14 : vector<32x16xf32>
    %cst_8 = arith.constant dense<0.000000e+00> : vector<32xf32>
    %16 = vector.multi_reduction <add>, %15, %cst_8 [1] : vector<32x16xf32> to vector<32xf32>
    %17 = vector.shape_cast %16 : vector<32xf32> to vector<32x1xf32>
    %18 = arith.addf %12, %17 : vector<32x1xf32>
    %c0_9 = arith.constant 0 : index
    %c0_10 = arith.constant 0 : index
    %19 = vector.load %arg7[%c0_9, %c0_10] : memref<32x1xf32, #tpu.memory_space<vmem>>, vector<32x1xf32>
    tpu.vector_store %arg7[%c0_9, %c0_10], %18 {strides = array<i32>} : memref<32x1xf32, #tpu.memory_space<vmem>>, vector<32x1xf32>,
    %c0_11 = arith.constant 0 : index
    %c0_12 = arith.constant 0 : index
    %20 = vector.load %arg6[%c0_11, %c0_12] : memref<32x1xf32, #tpu.memory_space<vmem>>, vector<32x1xf32>
    tpu.vector_store %arg6[%c0_11, %c0_12], %8 {strides = array<i32>} : memref<32x1xf32, #tpu.memory_space<vmem>>, vector<32x1xf32>,
    %21 = tpu.iota {dimensions = array<i32: 1>} : vector<32x16xi32>
    %c16_i32 = arith.constant 16 : i32
    %22 = arith.muli %arg1, %c16_i32 : i32
    %23 = vector.broadcast %22 : i32 to vector<32x16xi32>
    %24 = arith.addi %21, %23 : vector<32x16xi32>
    %c0_13 = arith.constant 0 : index
    %c0_14 = arith.constant 0 : index
    %25 = vector.load %arg8[%c0_13, %c0_14] : memref<32x1xf32, #tpu.memory_space<vmem>>, vector<32x1xf32>
    %26 = vector.broadcast %4 : vector<32x1xi32> to vector<32x16xi32>
    %27 = arith.cmpi eq, %24, %26 : vector<32x16xi32>
    %cst_15 = arith.constant 0.000000e+00 : f32
    %28 = vector.broadcast %cst_15 : f32 to vector<32x16xf32>
    %29 = arith.select %27, %3, %28 : vector<32x16xi1>, vector<32x16xf32>
    %cst_16 = arith.constant dense<0.000000e+00> : vector<32xf32>
    %30 = vector.multi_reduction <add>, %29, %cst_16 [1] : vector<32x16xf32> to vector<32xf32>
    %31 = vector.shape_cast %30 : vector<32xf32> to vector<32x1xf32>
    %32 = arith.addf %25, %31 : vector<32x1xf32>
    %c0_17 = arith.constant 0 : index
    %c0_18 = arith.constant 0 : index
    %33 = vector.load %arg8[%c0_17, %c0_18] : memref<32x1xf32, #tpu.memory_space<vmem>>, vector<32x1xf32>
    tpu.vector_store %arg8[%c0_17, %c0_18], %32 {strides = array<i32>} : memref<32x1xf32, #tpu.memory_space<vmem>>, vector<32x1xf32>,
    %c0_i32_19 = arith.constant 0 : i32
    %34 = arith.cmpi eq, %arg1, %c0_i32_19 : i32
    %35 = arith.extui %34 : i1 to i32
    %c0_i32_20 = arith.constant 0 : i32
    %36 = arith.cmpi ne, %35, %c0_i32_20 : i32
    scf.if %36 {
      %c0_21 = arith.constant 0 : index
      %c0_22 = arith.constant 0 : index
      %37 = vector.load %arg6[%c0_21, %c0_22] : memref<32x1xf32, #tpu.memory_space<vmem>>, vector<32x1xf32>
      %c0_23 = arith.constant 0 : index
      %c0_24 = arith.constant 0 : index
      %38 = vector.load %arg7[%c0_23, %c0_24] : memref<32x1xf32, #tpu.memory_space<vmem>>, vector<32x1xf32>
      %39 = math.log %38 : vector<32x1xf32>
      %40 = arith.addf %37, %39 : vector<32x1xf32>
      %c0_25 = arith.constant 0 : index
      %c0_26 = arith.constant 0 : index
      %41 = vector.load %arg4[%c0_25, %c0_26] : memref<32x1xf32, #tpu.memory_space<vmem>>, vector<32x1xf32>
      %c0_27 = arith.constant 0 : index
      %c0_28 = arith.constant 0 : index
      %42 = vector.load %arg8[%c0_27, %c0_28] : memref<32x1xf32, #tpu.memory_space<vmem>>, vector<32x1xf32>
      %43 = arith.subf %40, %42 : vector<32x1xf32>
      %44 = arith.mulf %41, %43 : vector<32x1xf32>
      %45 = vector.shape_cast %44 : vector<32x1xf32> to vector<1x32x1xf32>
      %cst_29 = arith.constant dense<0.000000e+00> : vector<1xf32>
      %46 = vector.multi_reduction <add>, %45, %cst_29 [1, 2] : vector<1x32x1xf32> to vector<1xf32>
      %47 = vector.shape_cast %46 : vector<1xf32> to vector<1x1x1xf32>
      %48 = vector.extract %47[0, 0, 0] : f32 from vector<1x1x1xf32>
      %49 = vector.shape_cast %41 : vector<32x1xf32> to vector<1x32x1xf32>
      %cst_30 = arith.constant dense<0.000000e+00> : vector<1xf32>
      %50 = vector.multi_reduction <add>, %49, %cst_30 [1, 2] : vector<1x32x1xf32> to vector<1xf32>
      %51 = vector.shape_cast %50 : vector<1xf32> to vector<1x1x1xf32>
      %52 = vector.extract %51[0, 0, 0] : f32 from vector<1x1x1xf32>
      %53 = tpu.iota {dimensions = array<i32: 2>} : vector<1x8x128xi32>
      %c0_i32_31 = arith.constant 0 : i32
      %54 = vector.broadcast %c0_i32_31 : i32 to vector<1x8x128xi32>
      %55 = arith.cmpi eq, %53, %54 : vector<1x8x128xi32>
      %c1_i32 = arith.constant 1 : i32
      %56 = vector.broadcast %c1_i32 : i32 to vector<1x8x128xi32>
      %57 = arith.cmpi eq, %53, %56 : vector<1x8x128xi32>
      %cst_32 = arith.constant 0.000000e+00 : f32
      %58 = vector.broadcast %52 : f32 to vector<1x8x128xf32>
      %59 = vector.broadcast %cst_32 : f32 to vector<1x8x128xf32>
      %60 = arith.select %57, %58, %59 : vector<1x8x128xi1>, vector<1x8x128xf32>
      %61 = vector.broadcast %48 : f32 to vector<1x8x128xf32>
      %62 = arith.select %55, %61, %60 : vector<1x8x128xi1>, vector<1x8x128xf32>
      %c0_33 = arith.constant 0 : index
      %c0_34 = arith.constant 0 : index
      %c0_35 = arith.constant 0 : index
      %63 = vector.load %arg5[%c0_33, %c0_34, %c0_35] : memref<1x8x128xf32, #tpu.memory_space<vmem>>, vector<1x8x128xf32>
      tpu.vector_store %arg5[%c0_33, %c0_34, %c0_35], %62 {strides = array<i32>} : memref<1x8x128xf32, #tpu.memory_space<vmem>>, vector<1x8x128xf32>,
    } else {
    }
    return
  }
  func.func @transform_0(%arg0: i32, %arg1: i32) -> (i32, i32) {
    %c0_i32 = arith.constant 0 : i32
    return %arg0, %arg1 : i32, i32
  }
  func.func @transform_1(%arg0: i32, %arg1: i32) -> (i32, i32) {
    %c0_i32 = arith.constant 0 : i32
    %c0_i32_0 = arith.constant 0 : i32
    return %arg0, %c0_i32 : i32, i32
  }
  func.func @transform_2(%arg0: i32, %arg1: i32) -> (i32, i32) {
    %c0_i32 = arith.constant 0 : i32
    %c0_i32_0 = arith.constant 0 : i32
    return %arg0, %c0_i32 : i32, i32
  }
  func.func @transform_3(%arg0: i32, %arg1: i32) -> (i32, i32, i32) {
    %c0_i32 = arith.constant 0 : i32
    %c0_i32_0 = arith.constant 0 : i32
    %c0_i32_1 = arith.constant 0 : i32
    return %arg0, %c0_i32, %c0_i32_0 : i32, i32, i32
  }
}

</mosaic_0001>

<bundles_post_ra>
// kernel: tpu_custom_call.1
= control target key start
LH: loop header
LB: loop body
LE: loop exit
PB: predicated region body
PF: predicated region fallthrough
CT: control target
= control target key end

     0   :  { %vm44_vm0 = vcmask 130048   ;;  %s534_s0 = inlined_call_operand.vmem [shape: f32[32,16], index: 0, kind: input, shape index: {}]   ;;  %s535_s1 = inlined_call_operand.vmem [shape: s32[32,1], index: 1, kind: input, shape index: {}]   ;;  %s536_s2 = inlined_call_operand.vmem [shape: f32[32,1], index: 2, kind: input, shape index: {}]   ;;  %s537_s3 = inlined_call_operand.hbm [shape: f32[1,8,128], index: 3, kind: output, shape index: {}]  }
   0x1   :  { %v362_v0 = vld [vmem:[%s534_s0] sm:$0xff]  ;;  %v367_v1 = vld [vmem:[%s534_s0 + $0x8] sm:$0xff]  ;;  %v372_v2 = vld [vmem:[%s534_s0 + $0x10] sm:$0xff] }
   0x2   :  { %v45_v3 = vsel %vm44_vm0, %v362_v0, -inf  ;;  %v51_v4 = vsel %vm44_vm0, %v372_v2, -inf  ;;  %v381_v5 = vld [vmem:[%s534_s0 + $0x18] sm:$0xff] }
   0x3   :  { %8 = vsyncpa [#allocation6], 0  ;;  %46 = vmax.xlane.f32.xlu0 %v45_v3  ;;  %52 = vmax.xlane.f32.xlu1 %v51_v4  ;;  %v48_v6 = vsel %vm44_vm0, %v367_v1, -inf  ;;  %v54_v7 = vsel %vm44_vm0, %v381_v5, -inf  ;;  %vm19_vm1 = vcmask 7168   ;;  %v335_v8 = vmov -inf  }
   0x4   :  { %20 = vst.msk [vmem:[#allocation2] sm:$0xff] %vm19_vm1, %v335_v8  ;;  %21 = vst.msk [vmem:[#allocation2 + $0x8] sm:$0xff] %vm19_vm1, %v335_v8  ;;  %v336_v9 = vmov 0   ;;  %v337_v10 = vmov 0.0   ;;  %v36_v27 = vld [vmem:[%s535_s1] sm:$0xff]  ;;  %v37_v28 = vld [vmem:[%s535_s1 + $0x8] sm:$0xff]  ;;  %v138_v44 = vlaneseq }
   0x5   :  { %22 = vst.msk [vmem:[#allocation2 + $0x10] sm:$0xff] %vm19_vm1, %v335_v8  ;;  %23 = vst.msk [vmem:[#allocation2 + $0x18] sm:$0xff] %vm19_vm1, %v335_v8  ;;  %287 = vset.pattern.permute.xlu0 %v336_v9  ;;  %288 = vset.pattern.permute.xlu1 %v336_v9  ;;  %v38_v29 = vld [vmem:[%s535_s1 + $0x10] sm:$0xff]  ;;  %v39_v30 = vld [vmem:[%s535_s1 + $0x18] sm:$0xff]  ;;  %s338_s7 = smov [#allocation5]  }
   0x6   :  { %24 = vst.msk [vmem:[#allocation3] sm:$0xff] %vm19_vm1, %v337_v10  ;;  %25 = vst.msk [vmem:[#allocation3 + $0x8] sm:$0xff] %vm19_vm1, %v337_v10  ;;  %v456_v48 = vand.u32 127, %v138_v44  ;;  %v476_v3 = vld [vmem:[%s536_s2] sm:$0xff]  ;;  %v491_v4 = vld [vmem:[%s536_s2 + $0x18] sm:$0xff]  ;;  %s271_s8 = sshll.u32 %s338_s7, 4  ;;  %s272_s8 = int_to_ptr.vmem [resolvable:$true] %s271_s8 }
   0x7   :  { %49 = vmax.xlane.f32.xlu0 %v48_v6  ;;  %55 = vmax.xlane.f32.xlu1 %v54_v7  ;;  %26 = vst.msk [vmem:[#allocation3 + $0x10] sm:$0xff] %vm19_vm1, %v337_v10  ;;  %27 = vst.msk [vmem:[#allocation3 + $0x18] sm:$0xff] %vm19_vm1, %v337_v10  ;;  %v247_v9 = vsel %vm19_vm1, %v491_v4, 0.0  ;;  %s313_s10 = scalar_lea.vmem %s272_s8, 128  ;;  %p318_p1 = scmp.lt.s32.totalorder %s272_s8, %s272_s8 }
   0x8   :  { %28 = vst.msk [vmem:[#allocation4] sm:$0xff] %vm19_vm1, %v337_v10  ;;  %29 = vst.msk [vmem:[#allocation4 + $0x8] sm:$0xff] %vm19_vm1, %v337_v10  ;;  %vm259_vm6 = vcmp.eq.s32.totalorder %v456_v48, 1  ;;  %vm258_vm7 = vcmp.eq.s32.totalorder %v456_v48, 0  ;;  %p314_p0 = scmp.ne.s32.totalorder %s272_s8, %s313_s10  ;;  %p319_p2 = scmp.lt.s32.totalorder %s313_s10, %s313_s10 }
   0x9   :  { %30 = vst.msk [vmem:[#allocation4 + $0x10] sm:$0xff] %vm19_vm1, %v337_v10  ;;  %31 = vst.msk [vmem:[#allocation4 + $0x18] sm:$0xff] %vm19_vm1, %v337_v10 }
   0xa   :  { %p320_p3 = por %p319_p2, %p318_p1 }
   0xb   :  { %v399_v11 = vld [vmem:[#allocation2] sm:$0xff]  ;;  %v409_v17 = vld [vmem:[#allocation2 + $0x8] sm:$0xff] }
   0xc   :  { %v401_v12 = vld [vmem:[#allocation2 + $0x10] sm:$0xff]  ;;  %v411_v18 = vld [vmem:[#allocation2 + $0x18] sm:$0xff]  ;;  %p321_p4 = pnand %p320_p3, %p314_p0 }
  0x8c   :  { %v47_v13 = vpop.xlane.xlu0 %46  ;;  %v53_v14 = vpop.xlane.xlu1 %52 }
  0x8d   :  { %v404_v15 = vmax.f32 %v399_v11, %v47_v13  ;;  %v407_v16 = vmax.f32 %v401_v12, %v53_v14 }
  0x8f   :  { %v65_v19 = vsub.f32 %v399_v11, %v404_v15  ;;  %134 = vst.msk [vmem:[#allocation2] sm:$0xff] %vm19_vm1, %v404_v15  ;;  %83 = vperm.xlu0 %287, %v404_v15   ;;  %v67_v20 = vsub.f32 %v401_v12, %v407_v16  ;;  %136 = vst.msk [vmem:[#allocation2 + $0x10] sm:$0xff] %vm19_vm1, %v407_v16  ;;  %v63_v12 = vld [vmem:[#allocation3 + $0x10] sm:$0xff] }
  0x90   :  { %v50_v21 = vpop.xlane.xlu0 %49  ;;  %v56_v22 = vpop.xlane.xlu1 %55 }
  0x91   :  { %v423_v23 = vmax.f32 %v409_v17, %v50_v21  ;;  %v426_v24 = vmax.f32 %v411_v18, %v56_v22  ;;  %v69_v14 = vmul.f32 1.442695, %v65_v19  ;;  %v73_v22 = vmul.f32 1.442695, %v67_v20 }
  0x93   :  { %v66_v25 = vsub.f32 %v409_v17, %v423_v23  ;;  %135 = vst.msk [vmem:[#allocation2 + $0x8] sm:$0xff] %vm19_vm1, %v423_v23  ;;  %88 = vperm.xlu1 %288, %v423_v23   ;;  %v68_v26 = vsub.f32 %v411_v18, %v426_v24  ;;  %137 = vst.msk [vmem:[#allocation2 + $0x18] sm:$0xff] %vm19_vm1, %v426_v24 }
  0x95   :  { %v71_v21 = vmul.f32 1.442695, %v66_v25 }
  0x97   :  { %93 = vperm.xlu1 %288, %v407_v16  }
  0x9b   :  { %98 = vperm.xlu1 %288, %v426_v24  }
  0x9f   :  { %148 = vperm.xlu1 %288, %v36_v27   ;;  %v75_v27 = vmul.f32 1.442695, %v68_v26  ;;  %v64_v26 = vld [vmem:[#allocation3 + $0x18] sm:$0xff] }
  0xa3   :  { %151 = vperm.xlu1 %288, %v37_v28  }
  0xa7   :  { %154 = vperm.xlu1 %288, %v38_v29   ;;  %v61_v29 = vld [vmem:[#allocation3] sm:$0xff] }
  0xab   :  { %157 = vperm.xlu1 %288, %v39_v30   ;;  %v62_v30 = vld [vmem:[#allocation3 + $0x8] sm:$0xff] }
 0x10a   :  { %v84_v31 = vpop.permute.xlu0 %83 }
 0x10b   :  { %v101_v32 = vsub.f32 %v362_v0, %v84_v31 }
 0x10d   :  { %v105_v33 = vmul.f32 1.442695, %v101_v32 }
 0x10e   :  { %v89_v34 = vpop.permute.xlu1 %88 }
 0x10f   :  { %289 = vpow2.f32 %v105_v33  ;;  %v102_v35 = vsub.f32 %v367_v1, %v89_v34  ;;  %v143_v33 = vld [vmem:[#allocation4] sm:$0xff] }
 0x111   :  { %v107_v36 = vmul.f32 1.442695, %v102_v35 }
 0x112   :  { %v94_v37 = vpop.permute.xlu1 %93 }
 0x113   :  { %291 = vpow2.f32 %v107_v36  ;;  %v103_v38 = vsub.f32 %v372_v2, %v94_v37 }
 0x115   :  { %v109_v39 = vmul.f32 1.442695, %v103_v38 }
 0x116   :  { %v99_v40 = vpop.permute.xlu1 %98 }
 0x117   :  { %293 = vpow2.f32 %v109_v39  ;;  %v104_v41 = vsub.f32 %v381_v5, %v99_v40  ;;  %v144_v40 = vld [vmem:[#allocation4 + $0x8] sm:$0xff] }
 0x119   :  { %v111_v42 = vmul.f32 1.442695, %v104_v41  ;;  %v145_v41 = vld [vmem:[#allocation4 + $0x10] sm:$0xff] }
 0x11a   :  { %v149_v43 = vpop.permute.xlu1 %148 }
 0x11b   :  { %295 = vpow2.f32 %v111_v42  ;;  %vm159_vm2 = vcmp.eq.s32.totalorder %v456_v48, %v149_v43 }
 0x11c   :  { %v290_v45 = vpop.eup %289  ;;  %v163_v54 = vsel %vm159_vm2, %v362_v0, 0.0  ;;  %297 = vpow2.f32 %v69_v14 }
 0x11d   :  { %v113_v46 = vsel %vm44_vm0, %v290_v45, 0.0  ;;  %v167_v57 = vsel %vm44_vm0, %v163_v54, 0.0  ;;  %299 = vpow2.f32 %v71_v21 }
 0x11e   :  { %v152_v47 = vpop.permute.xlu1 %151  ;;  %114 = vadd.xlane.f32.xlu1 %v113_v46  ;;  %301 = vpow2.f32 %v73_v22 }
 0x11f   :  { %vm160_vm3 = vcmp.eq.s32.totalorder %v456_v48, %v152_v47  ;;  %303 = vpow2.f32 %v75_v27  ;;  %v146_v47 = vld [vmem:[#allocation4 + $0x18] sm:$0xff] }
 0x120   :  { %v292_v49 = vpop.eup %291  ;;  %v164_v60 = vsel %vm160_vm3, %v367_v1, 0.0  ;;  %v481_v1 = vld [vmem:[%s536_s2 + $0x8] sm:$0xff]  ;;  %v193_v27 = vld [vmem:[#allocation2 + $0x18] sm:$0xff] }
 0x121   :  { %v116_v50 = vsel %vm44_vm0, %v292_v49, 0.0  ;;  %v170_v62 = vsel %vm44_vm0, %v164_v60, 0.0  ;;  %v243_v6 = vsel %vm19_vm1, %v481_v1, 0.0 }
 0x122   :  { %v155_v51 = vpop.permute.xlu1 %154  ;;  %117 = vadd.xlane.f32.xlu0 %v116_v50 }
 0x123   :  { %vm161_vm4 = vcmp.eq.s32.totalorder %v456_v48, %v155_v51 }
 0x124   :  { %v294_v52 = vpop.eup %293  ;;  %v165_v59 = vsel %vm161_vm4, %v372_v2, 0.0  ;;  %v486_v2 = vld [vmem:[%s536_s2 + $0x10] sm:$0xff] }
 0x125   :  { %v119_v53 = vsel %vm44_vm0, %v294_v52, 0.0  ;;  %v173_v61 = vsel %vm44_vm0, %v165_v59, 0.0  ;;  %v245_v7 = vsel %vm19_vm1, %v486_v2, 0.0  ;;  %v191_v59 = vld [vmem:[#allocation2 + $0x8] sm:$0xff] }
 0x126   :  { %120 = vadd.xlane.f32.xlu0 %v119_v53  ;;  %v158_v56 = vpop.permute.xlu1 %157 }
 0x127   :  { %vm162_vm5 = vcmp.eq.s32.totalorder %v456_v48, %v158_v56  ;;  %v190_v56 = vld [vmem:[#allocation2] sm:$0xff] }
 0x128   :  { %v296_v55 = vpop.eup %295  ;;  %v166_v63 = vsel %vm162_vm5, %v381_v5, 0.0  ;;  %v242_v5 = vsel %vm19_vm1, %v476_v3, 0.0 }
 0x129   :  { %v122_v58 = vsel %vm44_vm0, %v296_v55, 0.0  ;;  %v176_v0 = vsel %vm44_vm0, %v166_v63, 0.0  ;;  %v244_v8 = vadd.f32 %v243_v6, %v242_v5  ;;  %v298_v28 = vpop.eup %297 }
 0x12a   :  { %168 = vadd.xlane.f32.xlu0 %v167_v57  ;;  %123 = vadd.xlane.f32.xlu1 %v122_v58  ;;  %v77_v11 = vmul.f32 %v298_v28, %v61_v29  ;;  %v300_v15 = vpop.eup %299 }
 0x12b   :  { %v246_v10 = vadd.f32 %v245_v7, %v244_v8  ;;  %v78_v17 = vmul.f32 %v300_v15, %v62_v30  ;;  %v302_v23 = vpop.eup %301  ;;  %v192_v7 = vld [vmem:[#allocation2 + $0x10] sm:$0xff] }
 0x12c   :  { %v79_v20 = vmul.f32 %v302_v23, %v63_v12  ;;  %v304_v18 = vpop.eup %303 }
 0x12d   :  { %v248_v13 = vadd.f32 %v247_v9, %v246_v10  ;;  %v80_v35 = vmul.f32 %v304_v18, %v64_v26 }
 0x12e   :  { %174 = vadd.xlane.f32.xlu0 %v173_v61  ;;  %171 = vadd.xlane.f32.xlu1 %v170_v62 }
 0x132   :  { %177 = vadd.xlane.f32.xlu1 %v176_v0 }
 0x136   :  { %249 = vadd.xlane.f32.xlu1 %v248_v13 }
 0x1a7   :  { %v115_v19 = vpop.xlane.xlu1 %114 }
 0x1a8   :  { %v125_v31 = vadd.f32 %v115_v19, %v77_v11 }
 0x1aa   :  { %130 = vst.msk [vmem:[#allocation3] sm:$0xff] %vm19_vm1, %v125_v31 }
 0x1ab   :  { %v118_v25 = vpop.xlane.xlu0 %117 }
 0x1ac   :  { %v126_v16 = vadd.f32 %v118_v25, %v78_v17 }
 0x1ae   :  { %131 = vst.msk [vmem:[#allocation3 + $0x8] sm:$0xff] %vm19_vm1, %v126_v16 }
 0x1af   :  { %v121_v24 = vpop.xlane.xlu0 %120 }
 0x1b0   :  { %v127_v32 = vadd.f32 %v121_v24, %v79_v20 }
 0x1b1   :  { %v194_v34 = vld [vmem:[#allocation3] sm:$0xff] }
 0x1b2   :  { %132 = vst.msk [vmem:[#allocation3 + $0x10] sm:$0xff] %vm19_vm1, %v127_v32  ;;  %305 = vlog2.f32 %v194_v34 }
 0x1b3   :  { %v124_v36 = vpop.xlane.xlu1 %123  ;;  %v169_v37 = vpop.xlane.xlu0 %168 }
 0x1b4   :  { %v128_v38 = vadd.f32 %v124_v36, %v80_v35  ;;  %v179_v39 = vadd.f32 %v169_v37, %v143_v33 }
 0x1b5   :  { %v195_v42 = vld [vmem:[#allocation3 + $0x8] sm:$0xff] }
 0x1b6   :  { %133 = vst.msk [vmem:[#allocation3 + $0x18] sm:$0xff] %vm19_vm1, %v128_v38  ;;  %183 = vst.msk [vmem:[#allocation4] sm:$0xff] %vm19_vm1, %v179_v39  ;;  %307 = vlog2.f32 %v195_v42 }
 0x1b7   :  { %v172_v43 = vpop.xlane.xlu1 %171  ;;  %v175_v44 = vpop.xlane.xlu0 %174 }
 0x1b8   :  { %v180_v45 = vadd.f32 %v172_v43, %v144_v40  ;;  %v181_v46 = vadd.f32 %v175_v44, %v145_v41 }
 0x1b9   :  { %v196_v49 = vld [vmem:[#allocation3 + $0x10] sm:$0xff] }
 0x1ba   :  { %184 = vst.msk [vmem:[#allocation4 + $0x8] sm:$0xff] %vm19_vm1, %v180_v45  ;;  %185 = vst.msk [vmem:[#allocation4 + $0x10] sm:$0xff] %vm19_vm1, %v181_v46  ;;  %309 = vlog2.f32 %v196_v49 }
 0x1bb   :  { %v178_v50 = vpop.xlane.xlu1 %177 }
 0x1bc   :  { %v182_v51 = vadd.f32 %v178_v50, %v146_v47 }
 0x1bd   :  { %v197_v52 = vld [vmem:[#allocation3 + $0x18] sm:$0xff]  ;;  %v214_v62 = vld [vmem:[#allocation4] sm:$0xff] }
 0x1be   :  { %186 = vst.msk [vmem:[#allocation4 + $0x18] sm:$0xff] %vm19_vm1, %v182_v51  ;;  %311 = vlog2.f32 %v197_v52 }
 0x1bf   :  { %v306_v53 = vpop.eup %305 }
 0x1c0   :  { %v199_v54 = vmul.f32 0.6931472, %v306_v53 }
 0x1c1   :  { %v215_v63 = vld [vmem:[#allocation4 + $0x8] sm:$0xff]  ;;  %v216_v13 = vld [vmem:[#allocation4 + $0x10] sm:$0xff] }
 0x1c2   :  { %v206_v58 = vadd.f32 %v199_v54, %v190_v56 }
 0x1c3   :  { %v308_v55 = vpop.eup %307 }
 0x1c4   :  { %v201_v57 = vmul.f32 0.6931472, %v308_v55  ;;  %v218_v5 = vsub.f32 %v206_v58, %v214_v62 }
 0x1c5   :  { %v217_v15 = vld [vmem:[#allocation4 + $0x18] sm:$0xff] }
 0x1c6   :  { %v207_v60 = vadd.f32 %v201_v57, %v191_v59  ;;  %v222_v22 = vmul.f32 %v218_v5, %v476_v3  ;;  %v250_v3 = vpop.xlane.xlu1 %249 }
 0x1c7   :  { %v310_v61 = vpop.eup %309  ;;  %v251_v16 = vrot.slane %v250_v3, 4 }
 0x1c8   :  { %v203_v0 = vmul.f32 0.6931472, %v310_v61  ;;  %v219_v6 = vsub.f32 %v207_v60, %v215_v63  ;;  %v226_v30 = vsel %vm19_vm1, %v222_v22, 0.0 }
 0x1c9   :  { %v252_v20 = vadd.f32 %v251_v16, %v250_v3 }
 0x1ca   :  { %v208_v8 = vadd.f32 %v203_v0, %v192_v7  ;;  %v223_v9 = vmul.f32 %v219_v6, %v481_v1 }
 0x1cb   :  { %v312_v10 = vpop.eup %311 }
 0x1cc   :  { %v205_v14 = vmul.f32 0.6931472, %v312_v10  ;;  %v220_v21 = vsub.f32 %v208_v8, %v216_v13  ;;  %v227_v11 = vsel %vm19_vm1, %v223_v9, 0.0 }
 0x1cd   :  { %v228_v17 = vadd.f32 %v227_v11, %v226_v30 }
 0x1ce   :  { %v209_v28 = vadd.f32 %v205_v14, %v193_v27  ;;  %v224_v29 = vmul.f32 %v220_v21, %v486_v2  ;;  %v253_v2 = vrot.slane %v252_v20, 2 }
 0x1d0   :  { %v221_v19 = vsub.f32 %v209_v28, %v217_v15  ;;  %v229_v31 = vsel %vm19_vm1, %v224_v29, 0.0  ;;  %v254_v32 = vadd.f32 %v253_v2, %v252_v20 }
 0x1d1   :  { %v230_v23 = vadd.f32 %v229_v31, %v228_v17 }
 0x1d2   :  { %v225_v1 = vmul.f32 %v221_v19, %v491_v4  ;;  %v255_v35 = vrot.slane %v254_v32, 1 }
 0x1d4   :  { %v231_v25 = vsel %vm19_vm1, %v225_v1, 0.0  ;;  %v256_v38 = vadd.f32 %v255_v35, %v254_v32 }
 0x1d5   :  { %v232_v12 = vadd.f32 %v231_v25, %v230_v23 }
 0x1d7   :  { %233 = vadd.xlane.f32.xlu0 %v232_v12 }
 0x260   :  { %v234_v18 = vpop.xlane.xlu0 %233 }
 0x261   :  { %v235_v24 = vrot.slane %v234_v18, 4 }
 0x263   :  { %v236_v26 = vadd.f32 %v235_v24, %v234_v18 }
 0x265   :  { %v237_v33 = vrot.slane %v236_v26, 2 }
 0x267   :  { %v238_v34 = vadd.f32 %v237_v33, %v236_v26 }
 0x269   :  { %v239_v36 = vrot.slane %v238_v34, 1 }
 0x26b   :  { %v240_v37 = vadd.f32 %v239_v36, %v238_v34 }
 0x26d   :  { %279 = vpush %v240_v37 }
 0x26e   :  { %281 = vpush %v256_v38 }
 0x29e   :  { %s280_s2 = spop %279 }
 0x29f   :  { %v262_v4 = vstv %s280_s2  ;;  %s282_s9 = spop %281 }
 0x2a0   :  { %v260_v39 = vstv %s282_s9 }
 0x2a1   :  { %v261_v40 = vsel %vm259_vm6, %v260_v39, 0.0 }
 0x2a2   :  { %v263_v41 = vsel %vm258_vm7, %v262_v4, %v261_v40 }
 0x2a3   :  { %264 = vst [vmem:[#allocation5] sm:$0xff] %v263_v41 }
 0x2a4   :  { %324 = shalt.err (!%p321_p4)
}
 0x2a5   :  { %274 = dma.vmem_to_hbm [thread:$0]  %s272_s8, 128, %s537_s3, [#allocation6]  }
 0x2a6   :  { %333 = dma.done.wait [#allocation6], 128  }
 0x2a7   :  { %334 = vsyncadd [#allocation6], 4294967168 }
 0x2a8   :  { %278 = vsyncpa [#allocation6], 1 }

</bundles_post_ra>
